<compile_context>
chip_gen: v7x
topology: tpu7x:2x2x1
jax: 0.10.0
libtpu: 0.0.40
codegen_flags: <defaults>
</compile_context>

<pallas_src>
import jax
import jax.numpy as jnp
from jax.experimental import pallas as pl
from jax.experimental.pallas import tpu as pltpu

_OUT_PAD = 128  # W3 column pad (lane-dense MXU pass); only column 0 is real


def critic_kernel(state_ref, action_ref, w1s_ref, w1a_ref, b1_ref,
                  w2_ref, b2_ref, w3_ref, b3_ref, out_ref):
    cd = w1s_ref.dtype  # matmul-operand dtype (bf16 by default, f32 escape hatch)

    # Layer 1: [state | action] @ W1 + b1, ReLU  (concat folded into two dots,
    # activations cast in-kernel, f32 accumulation).
    s = state_ref[...].astype(cd)
    a = action_ref[...].astype(cd)
    h1 = (jnp.dot(s, w1s_ref[...], preferred_element_type=jnp.float32)
          + jnp.dot(a, w1a_ref[...], preferred_element_type=jnp.float32)
          + b1_ref[...])
    h1 = jnp.maximum(h1, 0.0)

    # Layer 2: h1 @ W2 + b2, ReLU
    h2 = jnp.dot(h1.astype(cd), w2_ref[...],
                 preferred_element_type=jnp.float32) + b2_ref[...]
    h2 = jnp.maximum(h2, 0.0)

    # Layer 3: lane-dense MXU pass against the 128-col padded W3, but only the
    # real Q column (+ b3) is stored -> width-1 HBM writeback.
    q = jnp.dot(h2.astype(cd), w3_ref[...], preferred_element_type=jnp.float32)
    out_ref[...] = q[:, :1] + b3_ref[...]


def _round_up(x, m):
    return ((x + m - 1) // m) * m


def _choose_tile(b, block_b):
    """Batch tile: multiple of 16 sublanes (bf16 packing); for larger batches
    aim for >=4 grid steps so the 'parallel' axis shards across v7x's 2 TCs."""
    target = -(-b // 4)  # cdiv(b, 4)
    tb = _round_up(max(16, min(target, block_b)), 16)
    return min(tb, _round_up(block_b, 16))


def simple_critic_pallas(state, action, params, *, block_b=8192,
                         compute_dtype=jnp.bfloat16):
    """3-layer critic MLP in one pallas_call, batch-tiled and pipelined."""
    w1, b1, w2, b2, w3, b3 = params
    B, sd = state.shape
    ad = action.shape[1]
    in_dim, H = w1.shape
    assert in_dim == sd + ad

    # --- hidden-dim pad H -> multiple of 128 (bit-identical, weights resident) -
    H_pad = max(_round_up(H, 128), 128)
    pad_h = H_pad - H
    w1s = jnp.pad(w1[:sd, :], ((0, 0), (0, pad_h))).astype(compute_dtype)
    w1a = jnp.pad(w1[sd:, :], ((0, 0), (0, pad_h))).astype(compute_dtype)
    b1r = jnp.pad(b1, (0, pad_h)).reshape(1, H_pad).astype(jnp.float32)
    w2p = jnp.pad(w2, ((0, pad_h), (0, pad_h))).astype(compute_dtype)
    b2r = jnp.pad(b2, (0, pad_h)).reshape(1, H_pad).astype(jnp.float32)
    w3p = jnp.pad(w3, ((0, pad_h), (0, _OUT_PAD - w3.shape[1]))).astype(compute_dtype)
    b3r = b3.reshape(1, 1).astype(jnp.float32)

    # --- batch tiling -----------------------------------------------------
    tb = _choose_tile(B, block_b)
    b_pad = _round_up(B, tb)
    if b_pad != B:
        # TODO(synk): for very large ragged B, use grid=cdiv(B, tb) and rely on
        # Pallas boundary-block masking instead of this full-array pad copy.
        state = jnp.pad(state, ((0, b_pad - B), (0, 0)))
        action = jnp.pad(action, ((0, b_pad - B), (0, 0)))

    grid = (b_pad // tb,)

    q = pl.pallas_call(
        critic_kernel,
        out_shape=jax.ShapeDtypeStruct((b_pad, 1), jnp.float32),
        grid=grid,
        in_specs=[
            pl.BlockSpec((tb, sd), lambda i: (i, 0)),          # state: batch-blocked
            pl.BlockSpec((tb, ad), lambda i: (i, 0)),          # action: batch-blocked
            pl.BlockSpec((sd, H_pad), lambda i: (0, 0)),       # W1 (state rows): resident
            pl.BlockSpec((ad, H_pad), lambda i: (0, 0)),       # W1 (action rows): resident
            pl.BlockSpec((1, H_pad), lambda i: (0, 0)),        # b1: resident
            pl.BlockSpec((H_pad, H_pad), lambda i: (0, 0)),    # W2: resident
            pl.BlockSpec((1, H_pad), lambda i: (0, 0)),        # b2: resident
            pl.BlockSpec((H_pad, _OUT_PAD), lambda i: (0, 0)), # W3 (col-padded): resident
            pl.BlockSpec((1, 1), lambda i: (0, 0)),            # b3: resident
        ],
        out_specs=pl.BlockSpec((tb, 1), lambda i: (i, 0)),     # width-1 writeback
        compiler_params=pltpu.CompilerParams(
            dimension_semantics=("parallel",)),
    )(state, action, w1s, w1a, b1r, w2p, b2r, w3p, b3r)

    return q[:B]


def init_params(key, state_dim, action_dim, hidden_dim):
    """Deterministic init mirroring torch.nn.Linear's default
    U(-1/sqrt(fan_in), 1/sqrt(fan_in)). Weights stored [in, out]."""
    keys = jax.random.split(key, 6)

    def lin(kw, kb, fan_in, fan_out):
        bound = 1.0 / jnp.sqrt(jnp.float32(fan_in))
        w = jax.random.uniform(kw, (fan_in, fan_out), jnp.float32, -bound, bound)
        b = jax.random.uniform(kb, (fan_out,), jnp.float32, -bound, bound)
        return w, b

    in_dim = state_dim + action_dim
    w1, b1 = lin(keys[0], keys[1], in_dim, hidden_dim)
    w2, b2 = lin(keys[2], keys[3], hidden_dim, hidden_dim)
    w3, b3 = lin(keys[4], keys[5], hidden_dim, 1)
    return (w1, b1, w2, b2, w3, b3)


def simple_critic_ref(state, action, params):
    """Pure-JAX f32 reference matching the PyTorch forward exactly."""
    w1, b1, w2, b2, w3, b3 = params
    x = jnp.concatenate([state, action], axis=-1)
    h1 = jnp.maximum(x @ w1 + b1, 0.0)
    h2 = jnp.maximum(h1 @ w2 + b2, 0.0)
    return h2 @ w3 + b3


if __name__ == "__main__":
    B, STATE_DIM, ACTION_DIM, HIDDEN = 8, 12, 4, 64

    key = jax.random.PRNGKey(0)
    k_state, k_action, k_params = jax.random.split(key, 3)

    state = jax.random.normal(k_state, (B, STATE_DIM), dtype=jnp.float32)
    action = jax.random.normal(k_action, (B, ACTION_DIM), dtype=jnp.float32)
    params = init_params(k_params, STATE_DIM, ACTION_DIM, HIDDEN)

    q_ref = simple_critic_ref(state, action, params)

    # f32 compute path: should match the reference tightly.
    q_f32 = jax.block_until_ready(
        simple_critic_pallas(state, action, params, compute_dtype=jnp.float32))
    assert q_f32.shape == (B, 1)
    assert jnp.allclose(q_f32, q_ref, atol=1e-5, rtol=1e-5), (
        f"f32 mismatch: max abs err {jnp.max(jnp.abs(q_f32 - q_ref))}")

    # bf16 matmul-operand path (default / perf config): looser tolerance.
    # (For training-critical use, pass compute_dtype=jnp.float32.)
    q_bf16 = jax.block_until_ready(simple_critic_pallas(state, action, params))
    assert q_bf16.shape == (B, 1)
    assert jnp.allclose(q_bf16, q_ref, atol=5e-2, rtol=5e-2), (
        f"bf16 mismatch: max abs err {jnp.max(jnp.abs(q_bf16 - q_ref))}")

    print("KERNEL_OK")
</pallas_src>

<mosaic_0001>
module attributes {stable_mosaic.version = 11 : i64} {
  func.func @critic_kernel(%arg0: i32, %arg1: memref<16x12xf32, #tpu.memory_space<vmem>>, %arg2: memref<16x4xf32, #tpu.memory_space<vmem>>, %arg3: memref<12x128xf32, #tpu.memory_space<vmem>>, %arg4: memref<4x128xf32, #tpu.memory_space<vmem>>, %arg5: memref<1x128xf32, #tpu.memory_space<vmem>>, %arg6: memref<128x128xf32, #tpu.memory_space<vmem>>, %arg7: memref<1x128xf32, #tpu.memory_space<vmem>>, %arg8: memref<128x128xf32, #tpu.memory_space<vmem>>, %arg9: memref<1x1xf32, #tpu.memory_space<vmem>>, %arg10: memref<16x1xf32, #tpu.memory_space<vmem>>) attributes {dimension_semantics = [#tpu.dimension_semantics<parallel>], iteration_bounds = array<i64: 1>, scalar_prefetch = 0 : i64, scratch_operands = 0 : i64, tpu.core_type = #tpu.core_type<tc>, window_params = [{transform_indices = @transform_0, window_bounds = array<i64: 16, 12>}, {transform_indices = @transform_1, window_bounds = array<i64: 16, 4>}, {pipeline_mode = #tpu.pipeline_mode<synchronous>, transform_indices = @transform_2, window_bounds = array<i64: 12, 128>}, {pipeline_mode = #tpu.pipeline_mode<synchronous>, transform_indices = @transform_3, window_bounds = array<i64: 4, 128>}, {pipeline_mode = #tpu.pipeline_mode<synchronous>, transform_indices = @transform_4, window_bounds = array<i64: 1, 128>}, {pipeline_mode = #tpu.pipeline_mode<synchronous>, transform_indices = @transform_5, window_bounds = array<i64: 128, 128>}, {pipeline_mode = #tpu.pipeline_mode<synchronous>, transform_indices = @transform_6, window_bounds = array<i64: 1, 128>}, {pipeline_mode = #tpu.pipeline_mode<synchronous>, transform_indices = @transform_7, window_bounds = array<i64: 128, 128>}, {pipeline_mode = #tpu.pipeline_mode<synchronous>, transform_indices = @transform_8, window_bounds = array<i64: 1, 1>}, {transform_indices = @transform_9, window_bounds = array<i64: 16, 1>}]} {
    %c0 = arith.constant 0 : index
    %c0_0 = arith.constant 0 : index
    %0 = vector.load %arg1[%c0, %c0_0] : memref<16x12xf32, #tpu.memory_space<vmem>>, vector<16x12xf32>
    %c0_1 = arith.constant 0 : index
    %c0_2 = arith.constant 0 : index
    %1 = vector.load %arg2[%c0_1, %c0_2] : memref<16x4xf32, #tpu.memory_space<vmem>>, vector<16x4xf32>
    %c0_3 = arith.constant 0 : index
    %c0_4 = arith.constant 0 : index
    %2 = vector.load %arg3[%c0_3, %c0_4] : memref<12x128xf32, #tpu.memory_space<vmem>>, vector<12x128xf32>
    %cst = arith.constant dense<0.000000e+00> : vector<16x128xf32>
    %3 = tpu.matmul %0, %2, %cst {dimension_numbers = #tpu.dot_dimension_numbers<[1], [0], [0], [1], [0, 0, 1, 1], [], []>} : vector<16x12xf32>, vector<12x128xf32>, vector<16x128xf32> -> vector<16x128xf32>
    %c0_5 = arith.constant 0 : index
    %c0_6 = arith.constant 0 : index
    %4 = vector.load %arg4[%c0_5, %c0_6] : memref<4x128xf32, #tpu.memory_space<vmem>>, vector<4x128xf32>
    %cst_7 = arith.constant dense<0.000000e+00> : vector<16x128xf32>
    %5 = tpu.matmul %1, %4, %cst_7 {dimension_numbers = #tpu.dot_dimension_numbers<[1], [0], [0], [1], [0, 0, 1, 1], [], []>} : vector<16x4xf32>, vector<4x128xf32>, vector<16x128xf32> -> vector<16x128xf32>
    %6 = arith.addf %3, %5 : vector<16x128xf32>
    %c0_8 = arith.constant 0 : index
    %c0_9 = arith.constant 0 : index
    %7 = vector.load %arg5[%c0_8, %c0_9] : memref<1x128xf32, #tpu.memory_space<vmem>>, vector<1x128xf32>
    %8 = vector.broadcast %7 : vector<1x128xf32> to vector<16x128xf32>
    %9 = arith.addf %6, %8 : vector<16x128xf32>
    %cst_10 = arith.constant 0.000000e+00 : f32
    %10 = vector.broadcast %cst_10 : f32 to vector<16x128xf32>
    %11 = arith.maximumf %9, %10 : vector<16x128xf32>
    %c0_11 = arith.constant 0 : index
    %c0_12 = arith.constant 0 : index
    %12 = vector.load %arg6[%c0_11, %c0_12] : memref<128x128xf32, #tpu.memory_space<vmem>>, vector<128x128xf32>
    %cst_13 = arith.constant dense<0.000000e+00> : vector<16x128xf32>
    %13 = tpu.matmul %11, %12, %cst_13 {dimension_numbers = #tpu.dot_dimension_numbers<[1], [0], [0], [1], [0, 0, 1, 1], [], []>} : vector<16x128xf32>, vector<128x128xf32>, vector<16x128xf32> -> vector<16x128xf32>
    %c0_14 = arith.constant 0 : index
    %c0_15 = arith.constant 0 : index
    %14 = vector.load %arg7[%c0_14, %c0_15] : memref<1x128xf32, #tpu.memory_space<vmem>>, vector<1x128xf32>
    %15 = vector.broadcast %14 : vector<1x128xf32> to vector<16x128xf32>
    %16 = arith.addf %13, %15 : vector<16x128xf32>
    %cst_16 = arith.constant 0.000000e+00 : f32
    %17 = vector.broadcast %cst_16 : f32 to vector<16x128xf32>
    %18 = arith.maximumf %16, %17 : vector<16x128xf32>
    %c0_17 = arith.constant 0 : index
    %c0_18 = arith.constant 0 : index
    %19 = vector.load %arg8[%c0_17, %c0_18] : memref<128x128xf32, #tpu.memory_space<vmem>>, vector<128x128xf32>
    %cst_19 = arith.constant dense<0.000000e+00> : vector<16x128xf32>
    %20 = tpu.matmul %18, %19, %cst_19 {dimension_numbers = #tpu.dot_dimension_numbers<[1], [0], [0], [1], [0, 0, 1, 1], [], []>} : vector<16x128xf32>, vector<128x128xf32>, vector<16x128xf32> -> vector<16x128xf32>
    %21 = vector.extract_strided_slice %20 {offsets = [0, 0], sizes = [16, 1], strides = [1, 1]} : vector<16x128xf32> to vector<16x1xf32>
    %c0_20 = arith.constant 0 : index
    %c0_21 = arith.constant 0 : index
    %22 = vector.load %arg9[%c0_20, %c0_21] : memref<1x1xf32, #tpu.memory_space<vmem>>, vector<1x1xf32>
    %23 = vector.broadcast %22 : vector<1x1xf32> to vector<16x1xf32>
    %24 = arith.addf %21, %23 : vector<16x1xf32>
    %c0_22 = arith.constant 0 : index
    %c0_23 = arith.constant 0 : index
    %25 = vector.load %arg10[%c0_22, %c0_23] : memref<16x1xf32, #tpu.memory_space<vmem>>, vector<16x1xf32>
    tpu.vector_store %arg10[%c0_22, %c0_23], %24 {strides = array<i32>} : memref<16x1xf32, #tpu.memory_space<vmem>>, vector<16x1xf32>,
    return
  }
  func.func @transform_0(%arg0: i32) -> (i32, i32) {
    %c0_i32 = arith.constant 0 : i32
    %c0_i32_0 = arith.constant 0 : i32
    return %arg0, %c0_i32 : i32, i32
  }
  func.func @transform_1(%arg0: i32) -> (i32, i32) {
    %c0_i32 = arith.constant 0 : i32
    %c0_i32_0 = arith.constant 0 : i32
    return %arg0, %c0_i32 : i32, i32
  }
  func.func @transform_2(%arg0: i32) -> (i32, i32) {
    %c0_i32 = arith.constant 0 : i32
    %c0_i32_0 = arith.constant 0 : i32
    %c0_i32_1 = arith.constant 0 : i32
    return %c0_i32, %c0_i32_0 : i32, i32
  }
  func.func @transform_3(%arg0: i32) -> (i32, i32) {
    %c0_i32 = arith.constant 0 : i32
    %c0_i32_0 = arith.constant 0 : i32
    %c0_i32_1 = arith.constant 0 : i32
    return %c0_i32, %c0_i32_0 : i32, i32
  }
  func.func @transform_4(%arg0: i32) -> (i32, i32) {
    %c0_i32 = arith.constant 0 : i32
    %c0_i32_0 = arith.constant 0 : i32
    %c0_i32_1 = arith.constant 0 : i32
    return %c0_i32, %c0_i32_0 : i32, i32
  }
  func.func @transform_5(%arg0: i32) -> (i32, i32) {
    %c0_i32 = arith.constant 0 : i32
    %c0_i32_0 = arith.constant 0 : i32
    %c0_i32_1 = arith.constant 0 : i32
    return %c0_i32, %c0_i32_0 : i32, i32
  }
  func.func @transform_6(%arg0: i32) -> (i32, i32) {
    %c0_i32 = arith.constant 0 : i32
    %c0_i32_0 = arith.constant 0 : i32
    %c0_i32_1 = arith.constant 0 : i32
    return %c0_i32, %c0_i32_0 : i32, i32
  }
  func.func @transform_7(%arg0: i32) -> (i32, i32) {
    %c0_i32 = arith.constant 0 : i32
    %c0_i32_0 = arith.constant 0 : i32
    %c0_i32_1 = arith.constant 0 : i32
    return %c0_i32, %c0_i32_0 : i32, i32
  }
  func.func @transform_8(%arg0: i32) -> (i32, i32) {
    %c0_i32 = arith.constant 0 : i32
    %c0_i32_0 = arith.constant 0 : i32
    %c0_i32_1 = arith.constant 0 : i32
    return %c0_i32, %c0_i32_0 : i32, i32
  }
  func.func @transform_9(%arg0: i32) -> (i32, i32) {
    %c0_i32 = arith.constant 0 : i32
    %c0_i32_0 = arith.constant 0 : i32
    return %arg0, %c0_i32 : i32, i32
  }
}

</mosaic_0001>

<bundles_post_ra>
// kernel: tpu_custom_call.1
= control target key start
LH: loop header
LB: loop body
LE: loop exit
PB: predicated region body
PF: predicated region fallthrough
CT: control target
= control target key end

     0   :  { %s903_s0 = inlined_call_operand.vmem [shape: f32[16,12], index: 0, kind: input, shape index: {}]   ;;  %s904_s1 = inlined_call_operand.vmem [shape: f32[16,4], index: 1, kind: input, shape index: {}]   ;;  %s905_s2 = inlined_call_operand.hbm [shape: f32[12,128], index: 2, kind: input, shape index: {}]   ;;  %s906_s3 = inlined_call_operand.vmem [shape: f32[4,128], index: 3, kind: input, shape index: {}]   ;;  %s907_s4 = inlined_call_operand.vmem [shape: f32[1,128], index: 4, kind: input, shape index: {}]   ;;  %s908_s5 = inlined_call_operand.hbm [shape: f32[128,128], index: 5, kind: input, shape index: {}]   ;;  %s909_s6 = inlined_call_operand.vmem [shape: f32[1,128], index: 6, kind: input, shape index: {}]   ;;  %s910_s7 = inlined_call_operand.hbm [shape: f32[128,128], index: 7, kind: input, shape index: {}]   ;;  %s911_s8 = inlined_call_operand.<no memory space> [shape: f32[1,1], index: 8, kind: input, shape index: {}]   ;;  %s912_s9 = inlined_call_operand.vmem [shape: f32[16,1], index: 9, kind: output, shape index: {}]  }
   0x1   :  { %v14_v0 = vstv %s911_s8 }
   0x2   :  { %15 = vst [vmem:[#allocation2] sm:$0x1] %v14_v0 }
   0x3   :  { %16 = vsyncpa [#allocation4], 0 }
   0x4   :  { %17 = vsyncpa [#allocation6], 0  ;;  %s755_s11 = smov [#allocation5]   ;;  %s756_s13 = smov [#allocation3]  }
   0x5   :  { %s43_s12 = sshll.u32 %s755_s11, 4  ;;  %s27_s14 = sshll.u32 %s756_s13, 4  ;;  %s44_s12 = int_to_ptr.vmem [resolvable:$true] %s43_s12  ;;  %s814_s14 = int_to_ptr.vmem [resolvable:$true] %s27_s14 }
   0x6   :  { %s685_s17 = scalar_lea.hbm %s908_s5, 2048 }
   0x7   :  { %p686_p0 = scmp.ne.s32.totalorder %s908_s5, %s685_s17  ;;  %p689_p1 = scmp.lt.u32.totalorder %s685_s17, %s908_s5 }
   0x9   :  { %p691_p2 = pnand %p689_p1, %p686_p0 }
   0xb   :  { %694 = shalt.err (!%p691_p2)
}
   0xc   :  { %s695_s21 = scalar_lea.vmem %s44_s12, 2048  ;;  %p700_p4 = scmp.lt.s32.totalorder %s44_s12, %s44_s12 }
   0xd   :  { %p696_p3 = scmp.ne.s32.totalorder %s44_s12, %s695_s21  ;;  %p701_p5 = scmp.lt.s32.totalorder %s695_s21, %s695_s21 }
   0xf   :  { %p702_p6 = por %p701_p5, %p700_p4 }
  0x11   :  { %p703_p7 = pnand %p702_p6, %p696_p3 }
  0x13   :  { %706 = shalt.err (!%p703_p7)
}
  0x14   :  { %s757_s22 = smov 128   ;;  %s758_s23 = smov 8  }
  0x15   :  { %49 = dma.hbm_to_vmem [thread:$0]  %s908_s5, 2048, %s44_s12, [#allocation6], %s757_s22, %s757_s22, %s758_s23  }
  0x16   :  { %s707_s28 = scalar_lea.hbm %s905_s2, 256 }
  0x17   :  { %p708_p8 = scmp.ne.s32.totalorder %s905_s2, %s707_s28  ;;  %p711_p9 = scmp.lt.u32.totalorder %s707_s28, %s905_s2 }
  0x19   :  { %p713_p10 = pnand %p711_p9, %p708_p8 }
  0x1b   :  { %716 = shalt.err (!%p713_p10)
}
  0x1c   :  { %s717_s13 = scalar_lea.vmem %s814_s14, 256  ;;  %p722_p12 = scmp.lt.s32.totalorder %s814_s14, %s814_s14 }
  0x1d   :  { %p718_p11 = scmp.ne.s32.totalorder %s814_s14, %s717_s13  ;;  %p723_p13 = scmp.lt.s32.totalorder %s717_s13, %s717_s13 }
  0x1f   :  { %p724_p0 = por %p723_p13, %p722_p12 }
  0x21   :  { %p725_p1 = pnand %p724_p0, %p718_p11 }
  0x23   :  { %728 = shalt.err (!%p725_p1)
}
  0x24   :  { %33 = dma.hbm_to_vmem [thread:$0]  %s905_s2, 256, %s814_s14, [#allocation4], %s757_s22, %s757_s22, %s758_s23  }
  0x25   :  { %s759_s15 = smov [#allocation7]   ;;  %s729_s19 = scalar_lea.hbm %s910_s7, 2048 }
  0x26   :  { %s57_s16 = sshll.u32 %s759_s15, 4  ;;  %p730_p2 = scmp.ne.s32.totalorder %s910_s7, %s729_s19  ;;  %s58_s16 = int_to_ptr.vmem [resolvable:$true] %s57_s16 }
  0x27   :  { %p733_p3 = scmp.lt.u32.totalorder %s729_s19, %s910_s7 }
  0x29   :  { %p735_p4 = pnand %p733_p3, %p730_p2 }
  0x2b   :  { %738 = shalt.err (!%p735_p4)
}
  0x2c   :  { %s739_s25 = scalar_lea.vmem %s58_s16, 2048  ;;  %p744_p6 = scmp.lt.s32.totalorder %s58_s16, %s58_s16 }
  0x2d   :  { %p740_p5 = scmp.ne.s32.totalorder %s58_s16, %s739_s25  ;;  %p745_p7 = scmp.lt.s32.totalorder %s739_s25, %s739_s25 }
  0x2f   :  { %p746_p8 = por %p745_p7, %p744_p6 }
  0x31   :  { %p747_p9 = pnand %p746_p8, %p740_p5 }
  0x33   :  { %750 = shalt.err (!%p747_p9)
}
  0x34   :  { %63 = dma.hbm_to_vmem [thread:$0]  %s910_s7, 2048, %s58_s16, [#allocation6], %s757_s22, %s757_s22, %s758_s23  }
  0x35   :  { %751 = dma.done.wait [#allocation4], 256  }
  0x36   :  { %752 = vsyncadd [#allocation4], 4294967040 }
  0x37   :  { %753 = dma.done.wait [#allocation6], 4096  }
  0x38   :  { %754 = vsyncadd [#allocation6], 4294963200  ;;  %vm89_vm0 = vcmask 1043456   ;;  %vm760_vm1 = vmmov 1   ;;  %vm82_vm3 = vcmask 31744   ;;  %v79_v2 = vld [vmem:[#allocation3] sm:$0xff] }
  0x39   :  { %vm866_vm2 = vmpackc.low %vm89_vm0, %vm760_vm1  ;;  %v80_v3 = vld [vmem:[#allocation3 + $0x8] sm:$0xf]  ;;  %v81_v4 = vld [vmem:[%s906_s3] sm:$0xf]  ;;  %vm168_vm4 = vcmask 97280   ;;  %vm464_vm5 = vcmask 7168  }
  0x3a   :  { %v607_v5 = vpack.c.bf16 %v80_v3, %v79_v2  ;;  %525 = vmatprep.subr.msk.mxu1 %vm89_vm0, %v81_v4  ;;  %v77_v6 = vld [vmem:[%s904_s1] sm:$0xff]  ;;  %v78_v7 = vld [vmem:[%s904_s1 + $0x8] sm:$0xff]  ;;  %v264_v9 = vld [vmem:[#allocation5] sm:$0xff] }
  0x3b   :  { %v75_v8 = vld [vmem:[%s903_s0] sm:$0xff]  ;;  %526 = vmatpush3.msk.msra.mxu1 %vm89_vm0, %v81_v4  ;;  %527 = vmatprep.mubr.msk.f32.mxu1 %vm82_vm3, %v77_v6  ;;  %v267_v13 = vld [vmem:[#allocation5 + $0x18] sm:$0xff]  ;;  %v268_v16 = vld [vmem:[#allocation5 + $0x20] sm:$0xff] }
  0x3c   :  { %v265_v10 = vld [vmem:[#allocation5 + $0x8] sm:$0xff]  ;;  %609 = vmatprep.subr.msk.bf16.mxu0 %vm866_vm2, %v607_v5  ;;  %528 = vmatmul.mubr.msk.f32.vlgmr.msra.gmra.mrb[0].mxu1 %vm82_vm3, %v78_v7  ;;  %v266_v12 = vld [vmem:[#allocation5 + $0x10] sm:$0xff]  ;;  %v271_v20 = vld [vmem:[#allocation5 + $0x38] sm:$0xff] }
  0x3d   :  { %v613_v11 = vpack.c.bf16 %v265_v10, %v264_v9  ;;  %612 = vmatpush3.bf16.msk.msra.mxu0 %vm866_vm2, %v607_v5  ;;  %534 = vmatprep.mubr.msk.f32.mxu0 %vm168_vm4, %v75_v8  ;;  %v76_v14 = vld [vmem:[%s903_s0 + $0x8] sm:$0xff]  ;;  %v617_v15 = vpack.c.bf16 %v267_v13, %v266_v12  ;;  %v269_v17 = vld [vmem:[#allocation5 + $0x28] sm:$0xff]  ;;  %v272_v22 = vld [vmem:[#allocation5 + $0x40] sm:$0xff] }
  0x3e   :  { %v621_v18 = vpack.c.bf16 %v269_v17, %v268_v16  ;;  %v270_v19 = vld [vmem:[#allocation5 + $0x30] sm:$0xff]  ;;  %v273_v23 = vld [vmem:[#allocation5 + $0x48] sm:$0xff]  ;;  %v275_v26 = vld [vmem:[#allocation5 + $0x58] sm:$0xff] }
  0x3f   :  { %614 = vmatprep.subr.bf16.mxu1 %v613_v11  ;;  %v625_v21 = vpack.c.bf16 %v271_v20, %v270_v19  ;;  %v629_v24 = vpack.c.bf16 %v273_v23, %v272_v22  ;;  %v274_v25 = vld [vmem:[#allocation5 + $0x50] sm:$0xff]  ;;  %v276_v28 = vld [vmem:[#allocation5 + $0x60] sm:$0xff]  ;;  %v277_v29 = vld [vmem:[#allocation5 + $0x68] sm:$0xff] }
  0x40   :  { %616 = vmatpush3.bf16.msra.mxu1 %v613_v11  ;;  %535 = vmatmul.mubr.msk.f32.vlgmr.msra.gmra.mrb[0].mxu0 %vm168_vm4, %v76_v14  ;;  %v633_v27 = vpack.c.bf16 %v275_v26, %v274_v25  ;;  %v637_v30 = vpack.c.bf16 %v277_v29, %v276_v28  ;;  %v278_v31 = vld [vmem:[#allocation5 + $0x70] sm:$0xff]  ;;  %v279_v32 = vld [vmem:[#allocation5 + $0x78] sm:$0xff]  ;;  %v364_v34 = vld [vmem:[#allocation7] sm:$0xff] }
  0x41   :  { %618 = vmatprep.subr.bf16.mxu1 %v617_v15  ;;  %v641_v33 = vpack.c.bf16 %v279_v32, %v278_v31  ;;  %v365_v35 = vld [vmem:[#allocation7 + $0x8] sm:$0xff]  ;;  %v366_v36 = vld [vmem:[#allocation7 + $0x10] sm:$0xff]  ;;  %v367_v38 = vld [vmem:[#allocation7 + $0x18] sm:$0xff] }
  0x42   :  { %v645_v37 = vpack.c.bf16 %v365_v35, %v364_v34  ;;  %v649_v39 = vpack.c.bf16 %v367_v38, %v366_v36  ;;  %v368_v40 = vld [vmem:[#allocation7 + $0x20] sm:$0xff]  ;;  %v369_v41 = vld [vmem:[#allocation7 + $0x28] sm:$0xff]  ;;  %v370_v43 = vld [vmem:[#allocation7 + $0x30] sm:$0xff] }
  0x43   :  { %v653_v42 = vpack.c.bf16 %v369_v41, %v368_v40  ;;  %v371_v44 = vld [vmem:[#allocation7 + $0x38] sm:$0xff]  ;;  %v372_v46 = vld [vmem:[#allocation7 + $0x40] sm:$0xff]  ;;  %v373_v47 = vld [vmem:[#allocation7 + $0x48] sm:$0xff] }
  0x44   :  { %620 = vmatpush3.bf16.msra.mxu1 %v617_v15  ;;  %646 = vmatprep.subr.bf16.mxu0 %v645_v37  ;;  %v657_v45 = vpack.c.bf16 %v371_v44, %v370_v43  ;;  %v661_v48 = vpack.c.bf16 %v373_v47, %v372_v46  ;;  %v374_v49 = vld [vmem:[#allocation7 + $0x50] sm:$0xff]  ;;  %v375_v50 = vld [vmem:[#allocation7 + $0x58] sm:$0xff]  ;;  %v376_v52 = vld [vmem:[#allocation7 + $0x60] sm:$0xff] }
  0x45   :  { %622 = vmatprep.subr.bf16.mxu1 %v621_v18  ;;  %648 = vmatpush3.bf16.msra.mxu0 %v645_v37  ;;  %v665_v51 = vpack.c.bf16 %v375_v50, %v374_v49  ;;  %v377_v53 = vld [vmem:[#allocation7 + $0x68] sm:$0xff]  ;;  %v378_v2 = vld [vmem:[#allocation7 + $0x70] sm:$0xff]  ;;  %v379_v3 = vld [vmem:[#allocation7 + $0x78] sm:$0xff] }
  0x46   :  { %650 = vmatprep.subr.bf16.mxu0 %v649_v39  ;;  %v669_v54 = vpack.c.bf16 %v377_v53, %v376_v52  ;;  %v479_v58 = vld [vmem:[%s907_s4] ss:$0 sm:$0xff]  ;;  %v673_v4 = vpack.c.bf16 %v379_v3, %v378_v2 }
  0x47   :  { %v480_v5 = vld [vmem:[%s909_s6] ss:$0 sm:$0xff] }
  0x48   :  { %624 = vmatpush3.bf16.msra.mxu1 %v621_v18  ;;  %v481_v12 = vld [vmem:[#allocation2] ss:$0 sm:$0xff] }
  0x49   :  { %626 = vmatprep.subr.bf16.mxu1 %v625_v21  ;;  %652 = vmatpush3.bf16.msra.mxu0 %v649_v39 }
  0x4a   :  { %654 = vmatprep.subr.bf16.mxu0 %v653_v42 }
  0x4c   :  { %628 = vmatpush3.bf16.msra.mxu1 %v625_v21 }
  0x4d   :  { %630 = vmatprep.subr.bf16.mxu1 %v629_v24  ;;  %656 = vmatpush3.bf16.msra.mxu0 %v653_v42 }
  0x4e   :  { %658 = vmatprep.subr.bf16.mxu0 %v657_v45 }
  0x50   :  { %632 = vmatpush3.bf16.msra.mxu1 %v629_v24 }
  0x51   :  { %634 = vmatprep.subr.bf16.mxu1 %v633_v27  ;;  %660 = vmatpush3.bf16.msra.mxu0 %v657_v45 }
  0x52   :  { %662 = vmatprep.subr.bf16.mxu0 %v661_v48 }
  0x54   :  { %636 = vmatpush3.bf16.msra.mxu1 %v633_v27 }
  0x55   :  { %638 = vmatprep.subr.bf16.mxu1 %v637_v30  ;;  %664 = vmatpush3.bf16.msra.mxu0 %v661_v48 }
  0x56   :  { %666 = vmatprep.subr.bf16.mxu0 %v665_v51 }
  0x58   :  { %640 = vmatpush3.bf16.msra.mxu1 %v637_v30 }
  0x59   :  { %642 = vmatprep.subr.bf16.mxu1 %v641_v33  ;;  %668 = vmatpush3.bf16.msra.mxu0 %v665_v51 }
  0x5a   :  { %670 = vmatprep.subr.bf16.mxu0 %v669_v54 }
  0x5c   :  { %644 = vmatpush3.bf16.msra.mxu1 %v641_v33 }
  0x5d   :  { %672 = vmatpush3.bf16.msra.mxu0 %v669_v54 }
  0x5e   :  { %674 = vmatprep.subr.bf16.mxu0 %v673_v4 }
  0x61   :  { %676 = vmatpush3.bf16.msra.mxu0 %v673_v4 }
 0x10f   :  { %v529_v55 = vpop.f32.mrb[0].mxu1 }
 0x110   :  { %v159_v56 = vpop.f32.mrb[1].mxu1 }
 0x113   :  { %v536_v57 = vpop.f32.mrb[0].mxu0 }
 0x114   :  { %v250_v59 = vadd.f32 %v536_v57, %v529_v55  ;;  %v244_v60 = vpop.f32.mrb[1].mxu0 }
 0x115   :  { %v245_v61 = vadd.f32 %v244_v60, %v159_v56 }
 0x116   :  { %v261_v62 = vadd.f32 %v479_v58, %v250_v59 }
 0x117   :  { %v260_v63 = vadd.f32 %v479_v58, %v245_v61 }
 0x118   :  { %v263_v1 = vmax.f32 %v261_v62, 0.0 }
 0x119   :  { %v262_v0 = vmax.f32 %v260_v63, 0.0 }
 0x11b   :  { %569 = vmatprep.mubr.f32.mxu1 %v262_v0 }
 0x11c   :  { %570 = vmatmul.mubr.f32.vlgmr.msra.gmra.mrb[2].mxu1 %v263_v1 }
 0x1ef   :  { %v571_v6 = vpop.f32.mrb[2].mxu1 }
 0x1f0   :  { %v359_v7 = vadd.f32 %v571_v6, %v480_v5  ;;  %v353_v8 = vpop.f32.mrb[3].mxu1 }
 0x1f1   :  { %v354_v9 = vadd.f32 %v480_v5, %v353_v8 }
 0x1f2   :  { %v363_v11 = vmax.f32 %v359_v7, 0.0 }
 0x1f3   :  { %v362_v10 = vmax.f32 %v354_v9, 0.0 }
 0x1f5   :  { %604 = vmatprep.mubr.f32.mxu0 %v362_v10 }
 0x1f6   :  { %605 = vmatmul.mubr.f32.vlgmr.msra.gmra.mrb[2].mxu0 %v363_v11 }
 0x2c9   :  { %v606_v13 = vpop.f32.mrb[2].mxu0 }
 0x2ca   :  { %v463_v14 = vadd.f32 %v606_v13, %v481_v12  ;;  %v446_v15 = vpop.f32.mrb[3].mxu0 }
 0x2cb   :  { %v462_v16 = vadd.f32 %v481_v12, %v446_v15 }
 0x2cc   :  { %466 = vst.msk [vmem:[%s912_s9 + $0x8] sm:$0xff] %vm464_vm5, %v463_v14 }
 0x2cd   :  { %465 = vst.msk [vmem:[%s912_s9] sm:$0xff] %vm464_vm5, %v462_v16 }
 0x2ce   :  { %471 = vsyncpa [#allocation4], 1 }
 0x2cf   :  { %472 = vsyncpa [#allocation6], 1 }

</bundles_post_ra>
